<compile_context>
chip_gen: v7x
topology: tpu7x:2x2x1
jax: 0.10.0
libtpu: 0.0.40
codegen_flags: <defaults>
</compile_context>

<pallas_src>
import jax
import jax.numpy as jnp
from jax import lax
from jax.experimental import pallas as pl
from jax.experimental.pallas import tpu as pltpu

WEIGHTS_FINAL_INIT = 3e-3
BIAS_FINAL_INIT = 3e-4
LN_EPS = 1e-5  # nn.LayerNorm default


def _round_up(n, m):
    return ((n + m - 1) // m) * m


def _layernorm(h, gamma, beta, axis):
    """Two-pass LayerNorm (biased variance, eps inside sqrt) — PyTorch semantics."""
    mu = jnp.mean(h, axis=axis, keepdims=True)
    d = h - mu
    var = jnp.mean(d * d, axis=axis, keepdims=True)
    return d * lax.rsqrt(var + LN_EPS) * gamma + beta


def critic_kernel(xT_ref, aT_ref, w1_ref, p1_ref, w2h_ref, w2a_ref, p2_ref,
                  w3_ref, b3_ref, o_ref):
    cdt = w1_ref.dtype  # MXU operand dtype (f32 or bf16)

    # ---- fc1 -> ln1 -> relu -------------------------------------------------
    # Activations are (H1, TB): features on sublanes, batch dense on lanes.
    h = jnp.dot(w1_ref[...], xT_ref[...].astype(cdt),
                preferred_element_type=jnp.float32)
    h = h + p1_ref[:, 0:1]                                     # bias (H1, 1)
    h = _layernorm(h, p1_ref[:, 1:2], p1_ref[:, 2:3], axis=0)  # reduce features
    h = jnp.maximum(h, 0.0)

    # ---- fc2 over cat([h, a]) -> ln2 -> relu --------------------------------
    # The concat is expressed as two MXU passes against the split weight; no
    # VMEM concat buffer, no extra stores/reloads.
    h2 = (jnp.dot(w2h_ref[...], h.astype(cdt), preferred_element_type=jnp.float32)
          + jnp.dot(w2a_ref[...], aT_ref[...].astype(cdt),
                    preferred_element_type=jnp.float32))
    h2 = h2 + p2_ref[:, 0:1]
    h2 = _layernorm(h2, p2_ref[:, 1:2], p2_ref[:, 2:3], axis=0)
    h2 = jnp.maximum(h2, 0.0)

    # ---- fc3 scalar head on the (idle) MXU: (1,H2)@(H2,TB) -> (1,TB) --------
    out = jnp.dot(w3_ref[...], h2, preferred_element_type=jnp.float32) + b3_ref[0]
    o_ref[...] = out.astype(o_ref.dtype)  # lane-dense (1, TB) store


def critic_forward(x, a, params, *, block_b=4096):
    """x: [B, nb_states], a: [B, nb_actions] -> [B, 1] (float32)."""
    B, S = x.shape
    A = a.shape[1]
    w1, w2h, w2a = params["w1"], params["w2h"], params["w2a"]
    p1, p2 = params["p1"], params["p2"]
    w3, b3 = params["w3"], params["b3"]
    H1 = w1.shape[0]
    H2 = w2h.shape[0]
    assert w1.shape == (H1, S) and w2h.shape == (H2, H1) and w2a.shape == (H2, A)

    # Feature-major streaming: batch on the lane axis.  (In a larger pipeline
    # keep activations transposed end-to-end; these transposes are tiny here.)
    xT = x.T   # (S, B)
    aT = a.T   # (A, B)

    # Batch tile: multiple of 128 (lane width).  Aim for >= 2 grid steps so the
    # "parallel" batch axis can occupy both TensorCores on v7x.  No batch
    # padding: the ragged tail block is handled by Pallas (clipped writes),
    # safe because all math is batch-column independent.
    TB = max(128, min(_round_up(block_b, 128), _round_up(pl.cdiv(B, 2), 128)))
    grid = (pl.cdiv(B, TB),)

    out = pl.pallas_call(
        critic_kernel,
        out_shape=jax.ShapeDtypeStruct((1, B), jnp.float32),
        grid=grid,
        in_specs=[
            pl.BlockSpec((S, TB), lambda i: (0, i)),            # x^T (streamed)
            pl.BlockSpec((A, TB), lambda i: (0, i)),            # a^T (streamed)
            pl.BlockSpec((H1, S), lambda i: (0, 0)),            # fc1.weight
            pl.BlockSpec((H1, 3), lambda i: (0, 0)),            # [b1, g1, be1]
            pl.BlockSpec((H2, H1), lambda i: (0, 0)),           # fc2.weight[:, :H1]
            pl.BlockSpec((H2, A), lambda i: (0, 0)),            # fc2.weight[:, H1:]
            pl.BlockSpec((H2, 3), lambda i: (0, 0)),            # [b2, g2, be2]
            pl.BlockSpec((1, H2), lambda i: (0, 0)),            # fc3.weight
            pl.BlockSpec(memory_space=pltpu.MemorySpace.SMEM),  # fc3.bias scalar
        ],
        out_specs=pl.BlockSpec((1, TB), lambda i: (0, i)),
        compiler_params=pltpu.CompilerParams(
            dimension_semantics=("parallel",)),
    )(xT, aT, w1, p1, w2h, w2a, p2, w3, b3)
    # (1, B) -> (B, 1) is a free reshape (same row-major element order).
    return out.reshape(B, 1)


# --------------------------- init / reference --------------------------------

def fan_in_uniform(key, shape, fan_in):
    bound = 1.0 / jnp.sqrt(jnp.float32(fan_in))
    return jax.random.uniform(key, shape, jnp.float32, -bound, bound)


def init_params(key, nb_states, nb_actions, hidden1=32, hidden2=32):
    ks = jax.random.split(key, 6)
    # PyTorch nn.Linear weight layout: (out_features, in_features).
    w1 = fan_in_uniform(ks[0], (hidden1, nb_states), nb_states)
    b1 = fan_in_uniform(ks[1], (hidden1,), nb_states)
    fan2 = hidden1 + nb_actions
    w2 = fan_in_uniform(ks[2], (hidden2, fan2), fan2)
    b2 = fan_in_uniform(ks[3], (hidden2,), fan2)
    w3 = jax.random.uniform(ks[4], (1, hidden2), jnp.float32,
                            -WEIGHTS_FINAL_INIT, WEIGHTS_FINAL_INIT)
    b3 = jax.random.uniform(ks[5], (1,), jnp.float32,
                            -BIAS_FINAL_INIT, BIAS_FINAL_INIT)
    # LayerNorm affine params (PyTorch default gamma=1, beta=0).
    g1, be1 = jnp.ones((hidden1,), jnp.float32), jnp.zeros((hidden1,), jnp.float32)
    g2, be2 = jnp.ones((hidden2,), jnp.float32), jnp.zeros((hidden2,), jnp.float32)
    # Pack per-feature params as columns: (H, 3) = [bias | gamma | beta].
    p1 = jnp.stack([b1, g1, be1], axis=1)
    p2 = jnp.stack([b2, g2, be2], axis=1)
    return dict(w1=w1, w2h=w2[:, :hidden1], w2a=w2[:, hidden1:],
                p1=p1, p2=p2, w3=w3, b3=b3)


def critic_ref(x, a, p):
    """Pure-JAX f32 reference with the same semantics as the PyTorch module."""
    x = x.astype(jnp.float32)
    a = a.astype(jnp.float32)
    w1 = p["w1"].astype(jnp.float32)
    w2 = jnp.concatenate([p["w2h"], p["w2a"]], axis=1).astype(jnp.float32)
    b1, g1, be1 = p["p1"][:, 0], p["p1"][:, 1], p["p1"][:, 2]
    b2, g2, be2 = p["p2"][:, 0], p["p2"][:, 1], p["p2"][:, 2]
    h = jnp.maximum(_layernorm(x @ w1.T + b1, g1, be1, axis=-1), 0.0)
    c = jnp.concatenate([h, a], axis=-1)
    h2 = jnp.maximum(_layernorm(c @ w2.T + b2, g2, be2, axis=-1), 0.0)
    return h2 @ p["w3"].astype(jnp.float32).T + p["b3"][0]


if __name__ == "__main__":
    key = jax.random.PRNGKey(0)
    k_x, k_a, k_p = jax.random.split(key, 3)

    batch, nb_states, nb_actions = 300, 16, 4
    hidden1, hidden2 = 32, 32

    x = jax.random.normal(k_x, (batch, nb_states), jnp.float32)
    a = jax.random.normal(k_a, (batch, nb_actions), jnp.float32)
    params = init_params(k_p, nb_states, nb_actions, hidden1, hidden2)

    ref = critic_ref(x, a, params)

    # f32 run; block_b=128 forces a 3-step grid including a ragged tail block
    # (300 = 2*128 + 44) to exercise the no-padding path.
    out = jax.block_until_ready(critic_forward(x, a, params, block_b=128))
    assert out.shape == (batch, 1), out.shape
    assert jnp.allclose(out, ref, atol=1e-3, rtol=1e-3)

    # bf16-streamed run (activations + matmul weights in bf16, f32 MXU
    # accumulation and f32 LayerNorm math) — the bandwidth-saving config.
    params_bf16 = dict(params,
                       w1=params["w1"].astype(jnp.bfloat16),
                       w2h=params["w2h"].astype(jnp.bfloat16),
                       w2a=params["w2a"].astype(jnp.bfloat16))
    out_bf16 = jax.block_until_ready(
        critic_forward(x.astype(jnp.bfloat16), a.astype(jnp.bfloat16),
                       params_bf16, block_b=128))
    assert out_bf16.shape == (batch, 1), out_bf16.shape
    assert bool(jnp.all(jnp.isfinite(out_bf16)))
    assert jnp.allclose(out_bf16, ref, atol=2e-2)

    print("KERNEL_OK")
</pallas_src>

<mosaic_0001>
module attributes {stable_mosaic.version = 11 : i64} {
  func.func @critic_kernel(%arg0: i32, %arg1: memref<16x128xf32, #tpu.memory_space<vmem>>, %arg2: memref<4x128xf32, #tpu.memory_space<vmem>>, %arg3: memref<32x16xf32, #tpu.memory_space<vmem>>, %arg4: memref<32x3xf32, #tpu.memory_space<vmem>>, %arg5: memref<32x32xf32, #tpu.memory_space<vmem>>, %arg6: memref<32x4xf32, #tpu.memory_space<vmem>>, %arg7: memref<32x3xf32, #tpu.memory_space<vmem>>, %arg8: memref<1x32xf32, #tpu.memory_space<vmem>>, %arg9: memref<1xf32, #tpu.memory_space<smem>>, %arg10: memref<1x128xf32, #tpu.memory_space<vmem>>) attributes {dimension_semantics = [#tpu.dimension_semantics<parallel>], iteration_bounds = array<i64: 3>, scalar_prefetch = 0 : i64, scratch_operands = 0 : i64, tpu.core_type = #tpu.core_type<tc>, window_params = [{transform_indices = @transform_0, window_bounds = array<i64: 16, 128>}, {transform_indices = @transform_1, window_bounds = array<i64: 4, 128>}, {pipeline_mode = #tpu.pipeline_mode<synchronous>, transform_indices = @transform_2, window_bounds = array<i64: 32, 16>}, {pipeline_mode = #tpu.pipeline_mode<synchronous>, transform_indices = @transform_3, window_bounds = array<i64: 32, 3>}, {pipeline_mode = #tpu.pipeline_mode<synchronous>, transform_indices = @transform_4, window_bounds = array<i64: 32, 32>}, {pipeline_mode = #tpu.pipeline_mode<synchronous>, transform_indices = @transform_5, window_bounds = array<i64: 32, 4>}, {pipeline_mode = #tpu.pipeline_mode<synchronous>, transform_indices = @transform_6, window_bounds = array<i64: 32, 3>}, {pipeline_mode = #tpu.pipeline_mode<synchronous>, transform_indices = @transform_7, window_bounds = array<i64: 1, 32>}, {transform_indices = @transform_8, window_bounds = array<i64: 1>}, {transform_indices = @transform_9, window_bounds = array<i64: 1, 128>}]} {
    %c0 = arith.constant 0 : index
    %c0_0 = arith.constant 0 : index
    %0 = vector.load %arg3[%c0, %c0_0] : memref<32x16xf32, #tpu.memory_space<vmem>>, vector<32x16xf32>
    %c0_1 = arith.constant 0 : index
    %c0_2 = arith.constant 0 : index
    %1 = vector.load %arg1[%c0_1, %c0_2] : memref<16x128xf32, #tpu.memory_space<vmem>>, vector<16x128xf32>
    %cst = arith.constant dense<0.000000e+00> : vector<32x128xf32>
    %2 = tpu.matmul %0, %1, %cst {dimension_numbers = #tpu.dot_dimension_numbers<[1], [0], [0], [1], [0, 0, 1, 1], [], []>} : vector<32x16xf32>, vector<16x128xf32>, vector<32x128xf32> -> vector<32x128xf32>
    %c0_3 = arith.constant 0 : index
    %c0_4 = arith.constant 0 : index
    %3 = vector.load %arg4[%c0_3, %c0_4] : memref<32x3xf32, #tpu.memory_space<vmem>>, vector<32x1xf32>
    %4 = vector.broadcast %3 : vector<32x1xf32> to vector<32x128xf32>
    %5 = arith.addf %2, %4 : vector<32x128xf32>
    %c0_5 = arith.constant 0 : index
    %c1 = arith.constant 1 : index
    %6 = vector.load %arg4[%c0_5, %c1] : memref<32x3xf32, #tpu.memory_space<vmem>>, vector<32x1xf32>
    %c0_6 = arith.constant 0 : index
    %c2 = arith.constant 2 : index
    %7 = vector.load %arg4[%c0_6, %c2] : memref<32x3xf32, #tpu.memory_space<vmem>>, vector<32x1xf32>
    %cst_7 = arith.constant dense<0.000000e+00> : vector<128xf32>
    %8 = vector.multi_reduction <add>, %5, %cst_7 [0] : vector<32x128xf32> to vector<128xf32>
    %9 = vector.shape_cast %8 : vector<128xf32> to vector<1x128xf32>
    %cst_8 = arith.constant 3.200000e+01 : f32
    %10 = vector.broadcast %cst_8 : f32 to vector<1x128xf32>
    %11 = arith.divf %9, %10 : vector<1x128xf32>
    %12 = vector.broadcast %11 : vector<1x128xf32> to vector<32x128xf32>
    %13 = arith.subf %5, %12 : vector<32x128xf32>
    %14 = arith.mulf %13, %13 : vector<32x128xf32>
    %cst_9 = arith.constant dense<0.000000e+00> : vector<128xf32>
    %15 = vector.multi_reduction <add>, %14, %cst_9 [0] : vector<32x128xf32> to vector<128xf32>
    %16 = vector.shape_cast %15 : vector<128xf32> to vector<1x128xf32>
    %cst_10 = arith.constant 3.200000e+01 : f32
    %17 = vector.broadcast %cst_10 : f32 to vector<1x128xf32>
    %18 = arith.divf %16, %17 : vector<1x128xf32>
    %cst_11 = arith.constant 9.99999974E-6 : f32
    %19 = vector.broadcast %cst_11 : f32 to vector<1x128xf32>
    %20 = arith.addf %18, %19 : vector<1x128xf32>
    %21 = math.rsqrt %20 : vector<1x128xf32>
    %22 = vector.broadcast %21 : vector<1x128xf32> to vector<32x128xf32>
    %23 = arith.mulf %13, %22 : vector<32x128xf32>
    %24 = vector.broadcast %6 : vector<32x1xf32> to vector<32x128xf32>
    %25 = arith.mulf %23, %24 : vector<32x128xf32>
    %26 = vector.broadcast %7 : vector<32x1xf32> to vector<32x128xf32>
    %27 = arith.addf %25, %26 : vector<32x128xf32>
    %cst_12 = arith.constant 0.000000e+00 : f32
    %28 = vector.broadcast %cst_12 : f32 to vector<32x128xf32>
    %29 = arith.maximumf %27, %28 : vector<32x128xf32>
    %c0_13 = arith.constant 0 : index
    %c0_14 = arith.constant 0 : index
    %30 = vector.load %arg5[%c0_13, %c0_14] : memref<32x32xf32, #tpu.memory_space<vmem>>, vector<32x32xf32>
    %cst_15 = arith.constant dense<0.000000e+00> : vector<32x128xf32>
    %31 = tpu.matmul %30, %29, %cst_15 {dimension_numbers = #tpu.dot_dimension_numbers<[1], [0], [0], [1], [0, 0, 1, 1], [], []>} : vector<32x32xf32>, vector<32x128xf32>, vector<32x128xf32> -> vector<32x128xf32>
    %c0_16 = arith.constant 0 : index
    %c0_17 = arith.constant 0 : index
    %32 = vector.load %arg6[%c0_16, %c0_17] : memref<32x4xf32, #tpu.memory_space<vmem>>, vector<32x4xf32>
    %c0_18 = arith.constant 0 : index
    %c0_19 = arith.constant 0 : index
    %33 = vector.load %arg2[%c0_18, %c0_19] : memref<4x128xf32, #tpu.memory_space<vmem>>, vector<4x128xf32>
    %cst_20 = arith.constant dense<0.000000e+00> : vector<32x128xf32>
    %34 = tpu.matmul %32, %33, %cst_20 {dimension_numbers = #tpu.dot_dimension_numbers<[1], [0], [0], [1], [0, 0, 1, 1], [], []>} : vector<32x4xf32>, vector<4x128xf32>, vector<32x128xf32> -> vector<32x128xf32>
    %35 = arith.addf %31, %34 : vector<32x128xf32>
    %c0_21 = arith.constant 0 : index
    %c0_22 = arith.constant 0 : index
    %36 = vector.load %arg7[%c0_21, %c0_22] : memref<32x3xf32, #tpu.memory_space<vmem>>, vector<32x1xf32>
    %37 = vector.broadcast %36 : vector<32x1xf32> to vector<32x128xf32>
    %38 = arith.addf %35, %37 : vector<32x128xf32>
    %c0_23 = arith.constant 0 : index
    %c1_24 = arith.constant 1 : index
    %39 = vector.load %arg7[%c0_23, %c1_24] : memref<32x3xf32, #tpu.memory_space<vmem>>, vector<32x1xf32>
    %c0_25 = arith.constant 0 : index
    %c2_26 = arith.constant 2 : index
    %40 = vector.load %arg7[%c0_25, %c2_26] : memref<32x3xf32, #tpu.memory_space<vmem>>, vector<32x1xf32>
    %cst_27 = arith.constant dense<0.000000e+00> : vector<128xf32>
    %41 = vector.multi_reduction <add>, %38, %cst_27 [0] : vector<32x128xf32> to vector<128xf32>
    %42 = vector.shape_cast %41 : vector<128xf32> to vector<1x128xf32>
    %cst_28 = arith.constant 3.200000e+01 : f32
    %43 = vector.broadcast %cst_28 : f32 to vector<1x128xf32>
    %44 = arith.divf %42, %43 : vector<1x128xf32>
    %45 = vector.broadcast %44 : vector<1x128xf32> to vector<32x128xf32>
    %46 = arith.subf %38, %45 : vector<32x128xf32>
    %47 = arith.mulf %46, %46 : vector<32x128xf32>
    %cst_29 = arith.constant dense<0.000000e+00> : vector<128xf32>
    %48 = vector.multi_reduction <add>, %47, %cst_29 [0] : vector<32x128xf32> to vector<128xf32>
    %49 = vector.shape_cast %48 : vector<128xf32> to vector<1x128xf32>
    %cst_30 = arith.constant 3.200000e+01 : f32
    %50 = vector.broadcast %cst_30 : f32 to vector<1x128xf32>
    %51 = arith.divf %49, %50 : vector<1x128xf32>
    %cst_31 = arith.constant 9.99999974E-6 : f32
    %52 = vector.broadcast %cst_31 : f32 to vector<1x128xf32>
    %53 = arith.addf %51, %52 : vector<1x128xf32>
    %54 = math.rsqrt %53 : vector<1x128xf32>
    %55 = vector.broadcast %54 : vector<1x128xf32> to vector<32x128xf32>
    %56 = arith.mulf %46, %55 : vector<32x128xf32>
    %57 = vector.broadcast %39 : vector<32x1xf32> to vector<32x128xf32>
    %58 = arith.mulf %56, %57 : vector<32x128xf32>
    %59 = vector.broadcast %40 : vector<32x1xf32> to vector<32x128xf32>
    %60 = arith.addf %58, %59 : vector<32x128xf32>
    %cst_32 = arith.constant 0.000000e+00 : f32
    %61 = vector.broadcast %cst_32 : f32 to vector<32x128xf32>
    %62 = arith.maximumf %60, %61 : vector<32x128xf32>
    %c0_33 = arith.constant 0 : index
    %c0_34 = arith.constant 0 : index
    %63 = vector.load %arg8[%c0_33, %c0_34] : memref<1x32xf32, #tpu.memory_space<vmem>>, vector<1x32xf32>
    %cst_35 = arith.constant dense<0.000000e+00> : vector<1x128xf32>
    %64 = tpu.matmul %63, %62, %cst_35 {dimension_numbers = #tpu.dot_dimension_numbers<[1], [0], [0], [1], [0, 0, 1, 1], [], []>} : vector<1x32xf32>, vector<32x128xf32>, vector<1x128xf32> -> vector<1x128xf32>
    %c0_36 = arith.constant 0 : index
    %65 = memref.load %arg9[%c0_36] : memref<1xf32, #tpu.memory_space<smem>>
    %66 = vector.broadcast %65 : f32 to vector<1x128xf32>
    %67 = arith.addf %64, %66 : vector<1x128xf32>
    %c0_37 = arith.constant 0 : index
    %c0_38 = arith.constant 0 : index
    %68 = vector.load %arg10[%c0_37, %c0_38] : memref<1x128xf32, #tpu.memory_space<vmem>>, vector<1x128xf32>
    tpu.vector_store %arg10[%c0_37, %c0_38], %67 {strides = array<i32>} : memref<1x128xf32, #tpu.memory_space<vmem>>, vector<1x128xf32>,
    return
  }
  func.func @transform_0(%arg0: i32) -> (i32, i32) {
    %c0_i32 = arith.constant 0 : i32
    %c0_i32_0 = arith.constant 0 : i32
    return %c0_i32, %arg0 : i32, i32
  }
  func.func @transform_1(%arg0: i32) -> (i32, i32) {
    %c0_i32 = arith.constant 0 : i32
    %c0_i32_0 = arith.constant 0 : i32
    return %c0_i32, %arg0 : i32, i32
  }
  func.func @transform_2(%arg0: i32) -> (i32, i32) {
    %c0_i32 = arith.constant 0 : i32
    %c0_i32_0 = arith.constant 0 : i32
    %c0_i32_1 = arith.constant 0 : i32
    return %c0_i32, %c0_i32_0 : i32, i32
  }
  func.func @transform_3(%arg0: i32) -> (i32, i32) {
    %c0_i32 = arith.constant 0 : i32
    %c0_i32_0 = arith.constant 0 : i32
    %c0_i32_1 = arith.constant 0 : i32
    return %c0_i32, %c0_i32_0 : i32, i32
  }
  func.func @transform_4(%arg0: i32) -> (i32, i32) {
    %c0_i32 = arith.constant 0 : i32
    %c0_i32_0 = arith.constant 0 : i32
    %c0_i32_1 = arith.constant 0 : i32
    return %c0_i32, %c0_i32_0 : i32, i32
  }
  func.func @transform_5(%arg0: i32) -> (i32, i32) {
    %c0_i32 = arith.constant 0 : i32
    %c0_i32_0 = arith.constant 0 : i32
    %c0_i32_1 = arith.constant 0 : i32
    return %c0_i32, %c0_i32_0 : i32, i32
  }
  func.func @transform_6(%arg0: i32) -> (i32, i32) {
    %c0_i32 = arith.constant 0 : i32
    %c0_i32_0 = arith.constant 0 : i32
    %c0_i32_1 = arith.constant 0 : i32
    return %c0_i32, %c0_i32_0 : i32, i32
  }
  func.func @transform_7(%arg0: i32) -> (i32, i32) {
    %c0_i32 = arith.constant 0 : i32
    %c0_i32_0 = arith.constant 0 : i32
    %c0_i32_1 = arith.constant 0 : i32
    return %c0_i32, %c0_i32_0 : i32, i32
  }
  func.func @transform_8(%arg0: i32) -> i32 {
    %c0_i32 = arith.constant 0 : i32
    %c0_i32_0 = arith.constant 0 : i32
    return %c0_i32 : i32
  }
  func.func @transform_9(%arg0: i32) -> (i32, i32) {
    %c0_i32 = arith.constant 0 : i32
    %c0_i32_0 = arith.constant 0 : i32
    return %c0_i32, %arg0 : i32, i32
  }
}

</mosaic_0001>

<bundles_post_ra>
// kernel: tpu_custom_call.1
= control target key start
LH: loop header
LB: loop body
LE: loop exit
PB: predicated region body
PF: predicated region fallthrough
CT: control target
= control target key end

     0   :  { %s1560_s0 = inlined_call_operand.vmem [shape: f32[16,300], index: 0, kind: input, shape index: {}]   ;;  %s1561_s1 = inlined_call_operand.vmem [shape: f32[4,300], index: 1, kind: input, shape index: {}]   ;;  %s1562_s2 = inlined_call_operand.vmem [shape: f32[32,16], index: 2, kind: input, shape index: {}]   ;;  %s1563_s3 = inlined_call_operand.vmem [shape: f32[32,3], index: 3, kind: input, shape index: {}]   ;;  %s1564_s4 = inlined_call_operand.vmem [shape: f32[32,32], index: 4, kind: input, shape index: {}]   ;;  %s1565_s5 = inlined_call_operand.vmem [shape: f32[32,4], index: 5, kind: input, shape index: {}]   ;;  %s1566_s6 = inlined_call_operand.vmem [shape: f32[32,3], index: 6, kind: input, shape index: {}]   ;;  %s1567_s7 = inlined_call_operand.vmem [shape: f32[1,32], index: 7, kind: input, shape index: {}]   ;;  %s1568_s8 = inlined_call_operand.<no memory space> [shape: f32[1], index: 8, kind: input, shape index: {}]   ;;  %s1569_s9 = inlined_call_operand.hbm [shape: f32[1,300], index: 9, kind: output, shape index: {}]  }
   0x1   :  { %14 = sst [smem:[#allocation2]] %s1568_s8 }
   0x2   :  { %15 = vsyncpa [#allocation5], 0 }
   0x3   :  { %17 = vsyncpa [#allocation5 + $0x1], 0  ;;  %s1374_s11 = smov 0   ;;  %s1376_s12 = smov 0  }
   0x4   :  { %s1378_s13 = smov 0   ;;  %s1380_s14 = smov 0  }
   0x5 LB: > { %s1395_s8 = sadd.s32 4294967295, %s1312_s14   ;;  %s1071_s15 = sadd.s32 4294967294, %s1312_s14   ;;  %s1312_s14 = sphi %s1380_s14, %s1575_s14   ;;  %s1308_s13 = sphi %s1378_s13, %s1574_s13   ;;  %s1304_s12 = sphi %s1376_s12, %s1573_s12   ;;  %s1300_s11 = sphi %s1374_s11, %s1572_s11  }
   0x6   : > { %s1399_s16 = sadd.s32 1, %s1312_s14   ;;  %s30_s17 = sadd.s32 1, %s1308_s13 }
   0x7   : > { %s27_s18 = ssub.s32 %s1312_s14, %s1399_s16  ;;  %p37_p0 = scmp.ne.s32.totalorder %s1308_s13, %s1304_s12 }
   0x8   : > { %p28_p1 = scmp.eq.s32.totalorder %s27_s18, 0  ;;  %p38_p2 = scmp.eq.s32.totalorder %s1312_s14, 0 }
   0x9   : > { %p240_p3 = scmp.eq.s32.totalorder %s1395_s8, 2  ;;  %p245_p4 = scmp.ne.s32.totalorder %s1304_s12, %s1300_s11 }
   0xa   : > { %s1411_s19 = scalar_select %p28_p1, %s1308_s13, %s30_s17  }
   0xb   : > { %p39_p5 = por %p38_p2, %p37_p0  ;;  %p1413_p6 = por %p240_p3, %p37_p0 }
   0xc   : > { %p246_p7 = scmp.eq.s32.totalorder %s1071_s15, 2  ;;  %p1073_p9 = scmp.ge.s32.totalorder %s1312_s14, 3 }
   0xe   : > { %p1417_p8 = por %p246_p7, %p245_p4  ;;  %283 = sbr.rel (%p1073_p9) target bundleno = 28 (0x1c), region = 44 }
  0x15   : > { %286 = sbr.rel (!%p39_p5) target bundleno = 28 (0x1c), region = 48  ;;  %s288_s22 = sand.u32 (%p39_p5), 1, %s1308_s13  }
  0x16   : > { %s1075_s23 = sshll.u32 (%p39_p5), %s1312_s14, 3  ;;  %s1074_s24 = sshll.u32 (%p39_p5), %s288_s22, 4 }
  0x17   : > { %s292_s27 = scalar_lea.vmem (%p39_p5), %s1560_s0, %s1075_s23  ;;  %s290_s28 = scalar_lea.vmem (%p39_p5), [#allocation3], %s1074_s24 }
  0x18   : > { %v322_v0 = vld [vmem:[%s292_s27] sm:$0xff] (%p39_p5)  ;;  %v324_v1 = vld [vmem:[%s292_s27 + $0x18] sm:$0xff] (%p39_p5) }
  0x19   : > { %323 = vst [vmem:[%s290_s28] sm:$0xff] (%p39_p5), %v322_v0  ;;  %325 = vst [vmem:[%s290_s28 + $0x8] sm:$0xff] (%p39_p5), %v324_v1 }
  0x1c PF: > { %p1076_p10 = scmp.ge.s32.totalorder %s1312_s14, 1  ;;  %p337_p11 = scmp.lt.s32.totalorder %s1312_s14, 4 }
  0x1e   : > { %p338_p12 = pnand %p1076_p10, %p337_p11 }
  0x1f   : > { %s1430_s29 = sand.u32 (!%p338_p12), 1, %s1304_s12   ;;  %v386_v2 = vld [vmem:[%s1562_s2] sm:$0xff] (!%p338_p12)  ;;  %vm416_vm0 = vcmask (!%p338_p12), 130048   ;;  %v1314_v3 = vmov (!%p338_p12), 0   ;;  %v394_v5 = vld [vmem:[%s1563_s3 + $0x10] sm:$0xff] (!%p338_p12)  ;;  %v393_v8 = vld [vmem:[%s1563_s3 + $0x8] sm:$0xff] (!%p338_p12) }
  0x20   : > { %341 = sbr.rel (%p338_p12) target bundleno = 852 (0x354), region = 90  ;;  %s1077_s15 = sshll.u32 (!%p338_p12), %s1430_s29, 4  ;;  %1124 = vmatprep.mubr.msk.f32.mxu0 (!%p338_p12), %vm416_vm0, %v386_v2  ;;  %1230 = vset.pattern.permute.xlu0 (!%p338_p12), %v1314_v3  ;;  %v392_v4 = vld [vmem:[%s1563_s3] sm:$0xff] (!%p338_p12)  ;;  %v395_v10 = vld [vmem:[%s1563_s3 + $0x18] sm:$0xff] (!%p338_p12)  ;;  %v387_v11 = vld [vmem:[%s1562_s2 + $0x8] sm:$0xff] (!%p338_p12)  ;;  %v1315_v13 = vmov (!%p338_p12), 1  }
  0x21   : > { %398 = vperm.xlu0 (!%p338_p12), %1230, %v392_v4   ;;  %1231 = vset.pattern.permute.xlu1 (!%p338_p12), %v1314_v3  ;;  %s346_s24 = scalar_lea.vmem (!%p338_p12), [#allocation3], %s1077_s15  ;;  %v388_v12 = vld [vmem:[%s1562_s2 + $0x10] sm:$0xff] (!%p338_p12)  ;;  %v389_v14 = vld [vmem:[%s1562_s2 + $0x18] sm:$0xff] (!%p338_p12)  ;;  %v1316_v15 = vmov (!%p338_p12), 2   ;;  %p382_p13 = scmp.lt.s32.totalorder (!%p338_p12), %s1395_s8, 2  ;;  %vm615_vm1 = vcmask (!%p338_p12), 1043456  }
  0x22   : > { %v390_v6 = vld [vmem:[%s346_s24] sm:$0xff] (!%p338_p12)  ;;  %v391_v7 = vld [vmem:[%s346_s24 + $0x8] sm:$0xff] (!%p338_p12)  ;;  %408 = vperm.xlu1 (!%p338_p12), %1231, %v394_v5   ;;  %vm602_vm2 = vcmask (!%p338_p12), 31744   ;;  %vm704_vm3 = vcmask (!%p338_p12), 261120   ;;  %vm1318_vm4 = vmmov (!%p338_p12), 0   ;;  %s909_s10 = sld [smem:[#allocation2]] (!%p338_p12) }
  0x23   : > { %v1163_v9 = vpack.c.bf16 (!%p338_p12), %v391_v7, %v390_v6  ;;  %v597_v17 = vld [vmem:[%s1565_s5] sm:$0xff] (!%p338_p12)  ;;  %v598_v18 = vld [vmem:[%s1565_s5 + $0x8] sm:$0xff] (!%p338_p12)  ;;  %v599_v19 = vld [vmem:[%s1565_s5 + $0x10] sm:$0xff] (!%p338_p12)  ;;  %s1093_s15 = sshll.u32 (!%p338_p12), %s1395_s8, 4  ;;  %s381_s17 = scalar_lea.vmem (!%p338_p12), [#allocation4], %s1430_s29 }
  0x24   : > { %1132 = vmatprep.mubr.msk.f32.mxu1 (!%p338_p12), %vm602_vm2, %v597_v17  ;;  %v600_v20 = vld [vmem:[%s1565_s5 + $0x18] sm:$0xff] (!%p338_p12)  ;;  %v593_v21 = vld [vmem:[%s1564_s4] sm:$0xff] (!%p338_p12)  ;;  %v803_v22 = vld [vmem:[%s1566_s6 + $0x8] sm:$0xff] (!%p338_p12)  ;;  %s998_s18 = sshll.u32 (!%p338_p12), %s381_s17, 4  ;;  %s986_s25 = scalar_lea.sflag (!%p338_p12), [#allocation5], %s1430_s29  ;;  %s1519_s18 = int_to_ptr.vmem [resolvable:$true] %s998_s18 }
  0x25   : > { %1164 = vmatprep.subr.bf16.mxu0 (!%p338_p12), %v1163_v9  ;;  %403 = vperm.xlu0 (!%p338_p12), %1230, %v393_v8   ;;  %v802_v23 = vld [vmem:[%s1566_s6] sm:$0xff] (!%p338_p12)  ;;  %v804_v24 = vld [vmem:[%s1566_s6 + $0x10] sm:$0xff] (!%p338_p12)  ;;  %v805_v25 = vld [vmem:[%s1566_s6 + $0x18] sm:$0xff] (!%p338_p12)  ;;  %s1250_s26 = scalar_lea.vmem (!%p338_p12), %s1519_s18, 16 }
  0x26   : > { %1166 = vmatpush3.bf16.msra.mxu0 (!%p338_p12), %v1163_v9  ;;  %413 = vperm.xlu1 (!%p338_p12), %1231, %v395_v10   ;;  %p1251_p0 = scmp.ne.s32.totalorder (!%p338_p12), %s1519_s18, %s1250_s26 }
  0x27   : > { %s383_s23 = scalar_select %p382_p13, %s1395_s8, 2 }
  0x28   : > { %p1252_p1 = pnand %p1251_p0, %p1413_p6  ;;  %s1320_s8 = smov [#allocation4]  }
  0x29   : > { %1125 = vmatmul.mubr.msk.f32.vlgmr.msra.gmra.mrb[0].mxu0 %vm416_vm0, %v387_v11  ;;  %1232 = vset.pattern.permute.xlu0 %v1315_v13  ;;  %s1078_s24 = sshll.u32 %s383_s23, 2 }
  0x2a   : > { %1127 = vmatprep.mubr.msk.f32.mxu0 %vm416_vm0, %v388_v12  ;;  %1233 = vset.pattern.permute.xlu1 %v1315_v13  ;;  %s385_s27 = scalar_lea.vmem %s1561_s1, %s1078_s24  ;;  %s1517_s24 = scalar_lea.hbm %s1569_s9, %s1093_s15 }
  0x2b   : > { %554 = vperm.xlu1 %1233, %v393_v8   ;;  %550 = vperm.xlu0 %1232, %v392_v4   ;;  %v601_v16 = vld [vmem:[%s385_s27] sm:$0xf]  ;;  %p1253_p2 = pneg %p1252_p1  ;;  %s1254_s27 = sshll.u32 %s1320_s8, 4  ;;  %s1255_s27 = int_to_ptr.vmem [resolvable:$false] %s1254_s27 }
  0x2c   : > { %1130 = vmatprep.subr.msk.mxu1 %vm615_vm1, %v601_v16  ;;  %s1256_s28 = scalar_lea.vmem %s1255_s27, 32  ;;  %p1257_p3 = scmp.lt.s32.totalorder %s1519_s18, %s1255_s27 }
  0x2d   : > { %1128 = vmatmul.mubr.msk.f32.gmra.mrb[2].mxu0 %vm416_vm0, %v389_v14  ;;  %1131 = vmatpush3.msk.msra.mxu1 %vm615_vm1, %v601_v16  ;;  %p1258_p4 = scmp.lt.s32.totalorder %s1256_s28, %s1250_s26 }
  0x2e   : > { %1133 = vmatmul.mubr.msk.f32.vlgmr.msra.gmra.mrb[0].mxu1 %vm602_vm2, %v598_v18 }
  0x2f   : > { %1234 = vset.pattern.permute.xlu1 %v1316_v15  ;;  %1235 = vset.pattern.permute.xlu0 %v1316_v15  ;;  %p1259_p5 = por %p1258_p4, %p1257_p3 }
  0x30   : > { %570 = vperm.xlu1 %1234, %v392_v4   ;;  %574 = vperm.xlu0 %1235, %v393_v8  }
  0x31   : > { %1135 = vmatprep.mubr.msk.f32.mxu1 %vm602_vm2, %v599_v19  ;;  %p1260_p7 = pnand %p1259_p5, %p1253_p2 }
  0x32   : > { %1136 = vmatmul.mubr.msk.f32.gmra.mrb[2].mxu1 %vm602_vm2, %v600_v20 }
  0x33   : > { %1146 = vmatprep.mubr.msk.f32.mxu1 %vm704_vm3, %v593_v21 }
  0x34   : > { %1236 = vset.pattern.permute.xlu1 %v1315_v13  ;;  %578 = vperm.xlu0 %1235, %v394_v5  }
  0x35   : > { %558 = vperm.xlu1 %1236, %v394_v5  }
  0x38   : > { %1238 = vset.pattern.permute.xlu0 %v1314_v3 }
  0x39   : > { %562 = vperm.xlu1 %1236, %v395_v10   ;;  %808 = vperm.xlu0 %1238, %v802_v23  }
  0x3d   : > { %1237 = vset.pattern.permute.xlu1 %v1316_v15  ;;  %823 = vperm.xlu0 %1238, %v805_v25  }
  0x3e   : > { %582 = vperm.xlu1 %1237, %v395_v10  }
  0x41   : > { %1241 = vset.pattern.permute.xlu0 %v1315_v13 }
  0x42   : > { %1239 = vset.pattern.permute.xlu1 %v1314_v3  ;;  %869 = vperm.xlu0 %1241, %v803_v22  }
  0x43   : > { %813 = vperm.xlu1 %1239, %v803_v22  }
  0x46   : > { %873 = vperm.xlu0 %1241, %v804_v24  }
  0x47   : > { %818 = vperm.xlu1 %1239, %v804_v24  }
  0x4a   : > { %1244 = vset.pattern.permute.xlu0 %v1316_v15 }
  0x4b   : > { %1240 = vset.pattern.permute.xlu1 %v1315_v13  ;;  %893 = vperm.xlu0 %1244, %v804_v24  }
  0x4c   : > { %865 = vperm.xlu1 %1240, %v802_v23  }
  0x50   : > { %1242 = vset.pattern.permute.xlu1 %v1316_v15 }
  0x51   : > { %885 = vperm.xlu1 %1242, %v802_v23  }
  0x55   : > { %889 = vperm.xlu1 %1242, %v803_v22  }
  0x59   : > { %1243 = vset.pattern.permute.xlu1 %v1315_v13 }
  0x5a   : > { %877 = vperm.xlu1 %1243, %v805_v25  }
  0x5e   : > { %1245 = vset.pattern.permute.xlu1 %v1316_v15 }
  0x5f   : > { %897 = vperm.xlu1 %1245, %v805_v25  }
  0xa0   : > { %v399_v26 = vpop.permute.xlu0 %398 }
  0xa1   : > { %v409_v28 = vpop.permute.xlu1 %408 }
  0xa4   : > { %v404_v27 = vpop.permute.xlu0 %403 }
  0xa5   : > { %v414_v35 = vpop.permute.xlu1 %413 }
  0xaa   : > { %v555_v61 = vpop.permute.xlu1 %554  ;;  %v551_v6 = vpop.permute.xlu0 %550 }
  0xaf   : > { %v571_v2 = vpop.permute.xlu1 %570  ;;  %v575_v8 = vpop.permute.xlu0 %574 }
  0xb3   : > { %v579_v15 = vpop.permute.xlu0 %578 }
  0xb4   : > { %v559_v5 = vpop.permute.xlu1 %558 }
  0xb8   : > { %v563_v7 = vpop.permute.xlu1 %562 }
  0xbd   : > { %v583_v14 = vpop.permute.xlu1 %582 }
  0xfc   : > { %v1126_v29 = vpop.f32.mrb[0].mxu0 }
  0xfd   : > { %v501_v30 = vadd.f32 %v1126_v29, %v404_v27  ;;  %v495_v31 = vpop.f32.mrb[1].mxu0 }
  0xfe   : > { %v496_v32 = vadd.f32 %v495_v31, %v399_v26  ;;  %v595_v31 = vld [vmem:[%s1564_s4 + $0x10] sm:$0xff] }
 0x100   : > { %v514_v33 = vadd.f32 %v501_v30, %v496_v32  ;;  %v1129_v34 = vpop.f32.mrb[2].mxu0 }
 0x101   : > { %v505_v36 = vpop.f32.mrb[3].mxu0  ;;  %v511_v38 = vadd.f32 %v1129_v34, %v414_v35  ;;  %v1319_v34 = vmov 0.0   ;;  %v814_v35 = vpop.permute.xlu1 %813 }
 0x102   : > { %v506_v37 = vadd.f32 %v505_v36, %v409_v28  ;;  %1160 = vmatprep.mubr.msk.f32.mxu0 %vm1318_vm4, %v1319_v34  ;;  %v809_v36 = vpop.permute.xlu0 %808 }
 0x104   : > { %v515_v39 = vadd.f32 %v514_v33, %v506_v37  ;;  %v1317_v33 = vmov 0.0|0.0  }
 0x105   : > { %1175 = vmatprep.subr.bf16.mxu0 %v1317_v33 }
 0x106   : > { %v516_v40 = vadd.f32 %v515_v39, %v511_v38 }
 0x108   : > { %v517_v41 = vrot.slane %v516_v40, 4 }
 0x10a   : > { %v518_v42 = vadd.f32 %v517_v41, %v516_v40  ;;  %v819_v41 = vpop.permute.xlu1 %818 }
 0x10c   : > { %v519_v43 = vrot.slane %v518_v42, 2 }
 0x10e   : > { %v520_v44 = vadd.f32 %v519_v43, %v518_v42 }
 0x110   : > { %v521_v45 = vrot.slane %v520_v44, 1 }
 0x112   : > { %v522_v46 = vadd.f32 %v521_v45, %v520_v44  ;;  %v824_v44 = vpop.permute.xlu0 %823 }
 0x114   : > { %v524_v47 = vmul.f32 0.03125, %v522_v46 }
 0x116   : > { %v527_v48 = vsub.f32 %v506_v37, %v524_v47  ;;  %v528_v49 = vsub.f32 %v511_v38, %v524_v47  ;;  %v525_v50 = vsub.f32 %v496_v32, %v524_v47  ;;  %v526_v51 = vsub.f32 %v501_v30, %v524_v47  ;;  %v594_v30 = vld [vmem:[%s1564_s4 + $0x8] sm:$0xff]  ;;  %v596_v32 = vld [vmem:[%s1564_s4 + $0x18] sm:$0xff] }
 0x118   : > { %v529_v52 = vmul.f32 %v525_v50, %v525_v50  ;;  %v530_v53 = vmul.f32 %v526_v51, %v526_v51  ;;  %v531_v54 = vmul.f32 %v527_v48, %v527_v48  ;;  %v532_v56 = vmul.f32 %v528_v49, %v528_v49 }
 0x11a   : > { %v533_v55 = vadd.f32 %v530_v53, %v529_v52 }
 0x11c   : > { %v534_v57 = vadd.f32 %v533_v55, %v531_v54 }
 0x11e   : > { %v535_v58 = vadd.f32 %v534_v57, %v532_v56 }
 0x120   : > { %v536_v59 = vrot.slane %v535_v58, 4 }
 0x122   : > { %v537_v60 = vadd.f32 %v536_v59, %v535_v58 }
 0x124   : > { %v538_v62 = vrot.slane %v537_v60, 2 }
 0x126   : > { %v539_v63 = vadd.f32 %v538_v62, %v537_v60 }
 0x128   : > { %v540_v0 = vrot.slane %v539_v63, 1 }
 0x12a   : > { %v541_v1 = vadd.f32 %v540_v0, %v539_v63 }
 0x12c   : > { %v542_v3 = vmul.f32 0.03125, %v541_v1 }
 0x12e   : > { %v543_v4 = vadd.f32 1e-05, %v542_v3 }
 0x130   : > { %1246 = vrsqrt.f32 %v543_v4 }
 0x13a   : > { %v1247_v9 = vpop.eup %1246 }
 0x13b   : > { %v546_v10 = vmul.f32 %v1247_v9, %v526_v51  ;;  %v547_v11 = vmul.f32 %v1247_v9, %v527_v48  ;;  %v545_v12 = vmul.f32 %v1247_v9, %v525_v50  ;;  %v548_v13 = vmul.f32 %v1247_v9, %v528_v49 }
 0x13d   : > { %v566_v16 = vmul.f32 %v555_v61, %v546_v10  ;;  %v567_v17 = vmul.f32 %v559_v5, %v547_v11  ;;  %v565_v18 = vmul.f32 %v551_v6, %v545_v12  ;;  %v568_v19 = vmul.f32 %v563_v7, %v548_v13  ;;  %v866_v7 = vpop.permute.xlu1 %865 }
 0x13f   : > { %v585_v20 = vadd.f32 %v571_v2, %v565_v18  ;;  %v586_v21 = vadd.f32 %v575_v8, %v566_v16  ;;  %v588_v22 = vadd.f32 %v583_v14, %v568_v19  ;;  %v587_v23 = vadd.f32 %v579_v15, %v567_v17  ;;  %v870_v14 = vpop.permute.xlu0 %869 }
 0x141   : > { %v589_v24 = vmax.f32 %v585_v20, 0.0  ;;  %v590_v25 = vmax.f32 %v586_v21, 0.0  ;;  %v592_v26 = vmax.f32 %v588_v22, 0.0  ;;  %v591_v27 = vmax.f32 %v587_v23, 0.0  ;;  %v886_v12 = vpop.permute.xlu1 %885 }
 0x143   : > { %v1167_v28 = vpack.c.bf16 %v590_v25, %v589_v24  ;;  %v1171_v29 = vpack.c.bf16 %v592_v26, %v591_v27  ;;  %v874_v16 = vpop.permute.xlu0 %873 }
 0x145   : > { %1168 = vmatprep.subr.bf16.mxu1 %v1167_v28  ;;  %v890_v15 = vpop.permute.xlu1 %889 }
 0x146   : > { %1170 = vmatpush3.bf16.msra.mxu1 %v1167_v28 }
 0x147   : > { %1172 = vmatprep.subr.bf16.mxu1 %v1171_v29  ;;  %v894_v24 = vpop.permute.xlu0 %893 }
 0x149   : > { %v878_v17 = vpop.permute.xlu1 %877 }
 0x14a   : > { %1174 = vmatpush3.bf16.msra.mxu1 %v1171_v29 }
 0x14d   : > { %1147 = vmatmul.mubr.msk.f32.vlgmr.msra.gmra.mrb[0].mxu1 %vm704_vm3, %v594_v30  ;;  %v898_v23 = vpop.permute.xlu1 %897 }
 0x14e   : > { %1149 = vmatprep.mubr.msk.f32.mxu1 %vm704_vm3, %v595_v31 }
 0x151   : > { %1150 = vmatmul.mubr.msk.f32.gmra.mrb[2].mxu1 %vm704_vm3, %v596_v32 }
 0x220   : > { %v1148_v37 = vpop.f32.mrb[0].mxu1 }
 0x221   : > { %v827_v38 = vadd.f32 %v1148_v37, %v814_v35  ;;  %v783_v39 = vpop.f32.mrb[1].mxu1 }
 0x222   : > { %v826_v40 = vadd.f32 %v809_v36, %v783_v39 }
 0x224   : > { %v830_v42 = vadd.f32 %v827_v38, %v826_v40  ;;  %v1151_v43 = vpop.f32.mrb[2].mxu1 }
 0x225   : > { %v793_v45 = vpop.f32.mrb[3].mxu1  ;;  %v829_v47 = vadd.f32 %v1151_v43, %v824_v44 }
 0x226   : > { %v828_v46 = vadd.f32 %v819_v41, %v793_v45  ;;  %v910_v41 = vstv %s909_s10 }
 0x228   : > { %v831_v48 = vadd.f32 %v830_v42, %v828_v46 }
 0x22a   : > { %v832_v49 = vadd.f32 %v831_v48, %v829_v47 }
 0x22c   : > { %v833_v50 = vrot.slane %v832_v49, 4 }
 0x22e   : > { %v834_v51 = vadd.f32 %v833_v50, %v832_v49 }
 0x230   : > { %v835_v52 = vrot.slane %v834_v51, 2 }
 0x232   : > { %v836_v53 = vadd.f32 %v835_v52, %v834_v51 }
 0x234   : > { %v837_v54 = vrot.slane %v836_v53, 1 }
 0x236   : > { %v838_v55 = vadd.f32 %v837_v54, %v836_v53 }
 0x238   : > { %v839_v56 = vmul.f32 0.03125, %v838_v55 }
 0x23a   : > { %v842_v57 = vsub.f32 %v828_v46, %v839_v56  ;;  %v843_v58 = vsub.f32 %v829_v47, %v839_v56  ;;  %v840_v59 = vsub.f32 %v826_v40, %v839_v56  ;;  %v841_v60 = vsub.f32 %v827_v38, %v839_v56  ;;  %v908_v40 = vld [vmem:[%s1567_s7] sm:$0x1] }
 0x23c   : > { %v844_v61 = vmul.f32 %v840_v59, %v840_v59  ;;  %v845_v62 = vmul.f32 %v841_v60, %v841_v60  ;;  %v846_v63 = vmul.f32 %v842_v57, %v842_v57  ;;  %v847_v1 = vmul.f32 %v843_v58, %v843_v58 }
 0x23e   : > { %v848_v0 = vadd.f32 %v845_v62, %v844_v61 }
 0x240   : > { %v849_v2 = vadd.f32 %v848_v0, %v846_v63 }
 0x242   : > { %v850_v3 = vadd.f32 %v849_v2, %v847_v1 }
 0x244   : > { %v851_v4 = vrot.slane %v850_v3, 4 }
 0x246   : > { %v852_v5 = vadd.f32 %v851_v4, %v850_v3 }
 0x248   : > { %v853_v6 = vrot.slane %v852_v5, 2 }
 0x24a   : > { %v854_v8 = vadd.f32 %v853_v6, %v852_v5 }
 0x24c   : > { %v855_v9 = vrot.slane %v854_v8, 1 }
 0x24e   : > { %v856_v10 = vadd.f32 %v855_v9, %v854_v8 }
 0x250   : > { %v857_v11 = vmul.f32 0.03125, %v856_v10 }
 0x252   : > { %v858_v13 = vadd.f32 1e-05, %v857_v11 }
 0x254   : > { %1248 = vrsqrt.f32 %v858_v13 }
 0x25e   : > { %v1249_v18 = vpop.eup %1248 }
 0x25f   : > { %v860_v19 = vmul.f32 %v1249_v18, %v840_v59  ;;  %v861_v20 = vmul.f32 %v1249_v18, %v841_v60  ;;  %v862_v21 = vmul.f32 %v1249_v18, %v842_v57  ;;  %v863_v22 = vmul.f32 %v1249_v18, %v843_v58 }
 0x261   : > { %v880_v25 = vmul.f32 %v866_v7, %v860_v19  ;;  %v881_v26 = vmul.f32 %v870_v14, %v861_v20  ;;  %v882_v27 = vmul.f32 %v874_v16, %v862_v21  ;;  %v883_v28 = vmul.f32 %v878_v17, %v863_v22 }
 0x263   : > { %v900_v29 = vadd.f32 %v886_v12, %v880_v25  ;;  %v901_v30 = vadd.f32 %v890_v15, %v881_v26  ;;  %v903_v31 = vadd.f32 %v898_v23, %v883_v28  ;;  %v902_v32 = vadd.f32 %v894_v24, %v882_v27 }
 0x265   : > { %v904_v34 = vmax.f32 %v900_v29, 0.0  ;;  %v905_v35 = vmax.f32 %v901_v30, 0.0  ;;  %v907_v36 = vmax.f32 %v903_v31, 0.0  ;;  %v906_v37 = vmax.f32 %v902_v32, 0.0 }
 0x267   : > { %v1176_v38 = vpack.c.bf16 %v905_v35, %v904_v34  ;;  %v1179_v39 = vpack.c.bf16 %v907_v36, %v906_v37 }
 0x269   : > { %1177 = vmatpush3.bf16.msra.mxu0 %v1176_v38 }
 0x26a   : > { %1178 = vmatprep.subr.bf16.mxu0 %v1317_v33 }
 0x26d   : > { %1180 = vmatpush3.bf16.msra.mxu0 %v1179_v39 }
 0x270   : > { %1161 = vmatmul.mubr.msk.f32.vlgmr.msra.gmra.mrb[4].mxu0 %vm704_vm3, %v908_v40 }
 0x343   : > { %v980_v42 = vpop.f32.mrb[4].mxu0 }
 0x344   : > { %v981_v43 = vadd.f32 %v980_v42, %v910_v41  ;;  %v1162_v44 = vpop.f32.mrb[5].mxu0 }
 0x346   : > { %984 = vst [vmem:[%s381_s17] sm:$0x1] %v981_v43 }
 0x347   : > { %1263 = shalt.err (!%p1260_p7)
}
 0x348   : > { %s1264_s29 = scalar_lea.hbm %s1517_s24, 16  ;;  %s1268_s15 = scalar_lea.hbm %s1569_s9, 48 }
 0x349   : > { %p1265_p9 = scmp.ne.s32.totalorder %s1517_s24, %s1264_s29  ;;  %p1269_p12 = scmp.lt.u32.totalorder %s1517_s24, %s1569_s9 }
 0x34a   : > { %p1270_p13 = scmp.lt.u32.totalorder %s1268_s15, %s1264_s29  ;;  %p1272_p1 = scmp.lt.u32.totalorder %s1264_s29, %s1517_s24 }
 0x34b   : > { %p1266_p10 = pnand %p1265_p9, %p1413_p6 }
 0x34c   : > { %p1271_p0 = por %p1270_p13, %p1269_p12 }
 0x34d   : > { %p1267_p11 = pneg %p1266_p10 }
 0x34e   : > { %p1273_p2 = por %p1272_p1, %p1271_p0 }
 0x350   : > { %p1274_p3 = pnand %p1273_p2, %p1267_p11 }
 0x352   : > { %1277 = shalt.err (!%p1274_p3)
}
 0x353   : > { %1185 = dma.vmem_to_hbm [thread:$0]  (%p1413_p6), %s1519_s18, 16, %s1517_s24, %s986_s25  }
 0x354 PF: > { %p1191_p4 = scmp.ge.s32.totalorder %s1312_s14, 2  ;;  %s1010_s23 = sand.u32 1, %s1300_s11  }
 0x355   : > { %s1011_s26 = scalar_lea.sflag [#allocation5], %s1010_s23 }
 0x356   : > { %p1188_p5 = pnand %p1191_p4, %p1417_p8 }
 0x358   : > { %1295 = dma.done.wait (!%p1188_p5), %s1011_s26, 16  }
 0x359   : > { %1297 = vsyncadd (!%p1188_p5), %s1011_s26, 4294967280  ;;  %p20_p7 = scmp.ge.s32.totalorder %s1399_s16, 5   ;;  %s1572_s11 = smov %s1304_s12 }
 0x35a   : > { %s1573_s12 = smov %s1308_s13  ;;  %s1574_s13 = smov %s1411_s19 }
 0x35b   : > { %s1575_s14 = smov %s1399_s16  ;;  %22 = sbr.rel (!%p20_p7) target bundleno = 5 (0x5), region = 137 }
 0x362   :  { %1015 = vsyncpa [#allocation5], 1 }
 0x363   :  { %1017 = vsyncpa [#allocation5 + $0x1], 1 }

</bundles_post_ra>
